<compile_context>
chip_gen: v7x
topology: tpu7x:2x2x1
jax: 0.10.0
libtpu: 0.0.40
codegen_flags: <defaults>
</compile_context>

<pallas_src>
import jax
import jax.numpy as jnp
from jax.experimental import pallas as pl
from jax.experimental.pallas import tpu as pltpu


def _round_up(x, m):
    return (x + m - 1) // m * m


# ---------------------------------------------------------------------------
# Kernel 1: feature transform  XW = X @ W   (one pass over row blocks of X)
# ---------------------------------------------------------------------------
def xw_kernel(x_ref, w_ref, o_ref):
    o_ref[...] = jnp.dot(
        x_ref[...], w_ref[...], preferred_element_type=jnp.float32
    ).astype(o_ref.dtype)


# ---------------------------------------------------------------------------
# Kernel 2: aggregation  OUT = A_hat @ XW + b   (tiled k-reduction, f32 acc)
# ---------------------------------------------------------------------------
def agg_kernel(a_ref, xw_ref, b_ref, o_ref, acc_ref):
    k = pl.program_id(2)

    @pl.when(k == 0)
    def _():
        acc_ref[...] = jnp.zeros_like(acc_ref)

    acc_ref[...] += jnp.dot(
        a_ref[...], xw_ref[...], preferred_element_type=jnp.float32
    )

    @pl.when(k == pl.num_programs(2) - 1)
    def _():
        # Bias applied once per output tile, only in the finalize branch.
        o_ref[...] = (acc_ref[...] + b_ref[...]).astype(o_ref.dtype)


def gcn_forward(a_hat, x, w, b, *, tm=256, tk=256):
    """a_hat: [N,N] f32, x: [N,F] f32, w: [F,H] f32, b: [1,H] f32 -> [N,H] f32."""
    N, F = x.shape
    H = w.shape[1]

    # Lane-dense hidden dim (multiple of 128); 256-wide output tiles when the
    # padded hidden dim allows it.
    Hp = _round_up(H, 128)
    tn = 256 if Hp % 256 == 0 else 128
    Np = _round_up(N, max(tm, tk))

    # Zero-pad to tile multiples. Padded rows/cols contribute zeros and the
    # padded output region is sliced off at the end.
    x_p = jnp.zeros((Np, F), jnp.float32).at[:N, :].set(x)
    w_p = jnp.zeros((F, Hp), jnp.float32).at[:, :H].set(w)
    b_p = jnp.zeros((1, Hp), jnp.float32).at[:, :H].set(b)
    a_p = (
        jnp.zeros((Np, Np), jnp.bfloat16)
        .at[:N, :N]
        .set(a_hat.astype(jnp.bfloat16))
    )

    # --- Step 1: XW, computed once (hoisted out of the A_hat tile loop) -----
    xw = pl.pallas_call(
        xw_kernel,
        out_shape=jax.ShapeDtypeStruct((Np, Hp), jnp.bfloat16),
        grid=(Np // tm,),
        in_specs=[
            pl.BlockSpec((tm, F), lambda i: (i, 0)),
            pl.BlockSpec((F, Hp), lambda i: (0, 0)),
        ],
        out_specs=pl.BlockSpec((tm, Hp), lambda i: (i, 0)),
        compiler_params=pltpu.CompilerParams(
            dimension_semantics=("parallel",),
        ),
    )(x_p, w_p)

    # --- Step 2: A_hat @ XW + b, tiled with a k-reduction accumulator -------
    flops = 2 * Np * Np * Hp + 2 * Np * F * Hp
    bytes_accessed = Np * Np * 2 + Np * Hp * 2 + Np * Hp * 4 + Hp * 4

    out_p = pl.pallas_call(
        agg_kernel,
        out_shape=jax.ShapeDtypeStruct((Np, Hp), jnp.float32),
        grid_spec=pltpu.PrefetchScalarGridSpec(
            num_scalar_prefetch=0,
            grid=(Np // tm, Hp // tn, Np // tk),
            in_specs=[
                pl.BlockSpec((tm, tk), lambda i, j, k: (i, k)),   # A_hat tile
                pl.BlockSpec((tk, tn), lambda i, j, k: (k, j)),   # XW tile
                pl.BlockSpec((1, tn), lambda i, j, k: (0, j)),    # bias slab
            ],
            out_specs=pl.BlockSpec((tm, tn), lambda i, j, k: (i, j)),
            scratch_shapes=[pltpu.VMEM((tm, tn), jnp.float32)],
        ),
        compiler_params=pltpu.CompilerParams(
            dimension_semantics=("parallel", "parallel", "arbitrary"),
            vmem_limit_bytes=32 * 1024 * 1024,
        ),
        cost_estimate=pl.CostEstimate(
            flops=int(flops),
            transcendentals=0,
            bytes_accessed=int(bytes_accessed),
        ),
    )(a_p, xw, b_p)

    return out_p[:N, :H]


def build_normalized_adjacency(edge_index, num_nodes):
    """GCN normalization: D^{-1/2} (A + remaining self-loops) D^{-1/2}.

    edge_index: int32 [2, E]; row 0 = source nodes, row 1 = target nodes.
    Aggregation is source_to_target, so A[dst, src] accumulates edge weight 1.
    Duplicate edges are summed (scatter-add), and self-loops are added only to
    nodes that do not already have one (matches add_remaining_self_loops).
    """
    src, dst = edge_index[0], edge_index[1]
    A = jnp.zeros((num_nodes, num_nodes), jnp.float32)
    A = A.at[dst, src].add(1.0)
    diag = jnp.diagonal(A)
    A = A + jnp.diag(jnp.where(diag > 0, 0.0, 1.0))
    deg = A.sum(axis=1)
    dinv = jnp.where(deg > 0, jax.lax.rsqrt(deg), 0.0)
    return dinv[:, None] * A * dinv[None, :]


class GCN:
    """Pallas-backed equivalent of the PyTorch GCN module (one GCNConv).

    Note: the reference module's dropout arg is unused in forward(), so it is
    omitted here.
    """

    def __init__(self, nfeat, nhid, key):
        # Glorot-uniform init for GCNConv.lin.weight (shape [F, H]).
        limit = jnp.sqrt(6.0 / (nfeat + nhid))
        self.w = jax.random.uniform(key, (nfeat, nhid), jnp.float32, -limit, limit)
        # GCNConv bias defaults to zeros.
        self.b = jnp.zeros((1, nhid), jnp.float32)

    def __call__(self, x, edge_index):
        a_hat = build_normalized_adjacency(edge_index, x.shape[0])
        return gcn_forward(a_hat, x, self.w, self.b)


if __name__ == "__main__":
    key = jax.random.PRNGKey(0)
    k_x, k_w = jax.random.split(key)

    N, nfeat, nhid = 16, 8, 32  # small shapes consistent with GCNConv(nfeat, nhid)

    # Deterministic node features.
    x = jax.random.normal(k_x, (N, nfeat), jnp.float32)

    # Deterministic edge_index: bidirectional ring graph over N nodes.
    idx = jnp.arange(N, dtype=jnp.int32)
    nxt = (idx + 1) % N
    src = jnp.concatenate([idx, nxt])
    dst = jnp.concatenate([nxt, idx])
    edge_index = jnp.stack([src, dst], axis=0)  # [2, 2N]

    model = GCN(nfeat, nhid, k_w)
    out = jax.block_until_ready(model(x, edge_index))
    assert out.shape == (N, nhid)

    # Reference matching the kernel's precision path (bf16 A_hat / XW inputs,
    # f32 accumulation).
    a_hat = build_normalized_adjacency(edge_index, N)
    xw_f32 = x @ model.w
    a_bf = a_hat.astype(jnp.bfloat16).astype(jnp.float32)
    xw_bf = xw_f32.astype(jnp.bfloat16).astype(jnp.float32)
    ref = a_bf @ xw_bf + model.b
    assert jnp.allclose(out, ref, atol=1e-2, rtol=1e-2)

    # Loose sanity check against the full-f32 math.
    ref_f32 = a_hat @ xw_f32 + model.b
    assert jnp.allclose(out, ref_f32, atol=5e-2, rtol=5e-2)

    print("KERNEL_OK")
</pallas_src>

<mosaic_0001>
module attributes {stable_mosaic.version = 11 : i64} {
  func.func @xw_kernel(%arg0: i32, %arg1: memref<256x8xf32, #tpu.memory_space<vmem>>, %arg2: memref<8x128xf32, #tpu.memory_space<vmem>>, %arg3: memref<256x128xbf16, #tpu.memory_space<vmem>>) attributes {dimension_semantics = [#tpu.dimension_semantics<parallel>], iteration_bounds = array<i64: 1>, scalar_prefetch = 0 : i64, scratch_operands = 0 : i64, tpu.core_type = #tpu.core_type<tc>, window_params = [{transform_indices = @transform_0, window_bounds = array<i64: 256, 8>}, {pipeline_mode = #tpu.pipeline_mode<synchronous>, transform_indices = @transform_1, window_bounds = array<i64: 8, 128>}, {transform_indices = @transform_2, window_bounds = array<i64: 256, 128>}]} {
    %c0 = arith.constant 0 : index
    %c0_0 = arith.constant 0 : index
    %0 = vector.load %arg1[%c0, %c0_0] : memref<256x8xf32, #tpu.memory_space<vmem>>, vector<256x8xf32>
    %c0_1 = arith.constant 0 : index
    %c0_2 = arith.constant 0 : index
    %1 = vector.load %arg2[%c0_1, %c0_2] : memref<8x128xf32, #tpu.memory_space<vmem>>, vector<8x128xf32>
    %cst = arith.constant dense<0.000000e+00> : vector<256x128xf32>
    %2 = tpu.matmul %0, %1, %cst {dimension_numbers = #tpu.dot_dimension_numbers<[1], [0], [0], [1], [0, 0, 1, 1], [], []>} : vector<256x8xf32>, vector<8x128xf32>, vector<256x128xf32> -> vector<256x128xf32>
    %3 = arith.truncf %2 : vector<256x128xf32> to vector<256x128xbf16>
    %c0_3 = arith.constant 0 : index
    %c0_4 = arith.constant 0 : index
    %4 = vector.load %arg3[%c0_3, %c0_4] : memref<256x128xbf16, #tpu.memory_space<vmem>>, vector<256x128xbf16>
    tpu.vector_store %arg3[%c0_3, %c0_4], %3 {strides = array<i32>} : memref<256x128xbf16, #tpu.memory_space<vmem>>, vector<256x128xbf16>,
    return
  }
  func.func @transform_0(%arg0: i32) -> (i32, i32) {
    %c0_i32 = arith.constant 0 : i32
    %c0_i32_0 = arith.constant 0 : i32
    return %arg0, %c0_i32 : i32, i32
  }
  func.func @transform_1(%arg0: i32) -> (i32, i32) {
    %c0_i32 = arith.constant 0 : i32
    %c0_i32_0 = arith.constant 0 : i32
    %c0_i32_1 = arith.constant 0 : i32
    return %c0_i32, %c0_i32_0 : i32, i32
  }
  func.func @transform_2(%arg0: i32) -> (i32, i32) {
    %c0_i32 = arith.constant 0 : i32
    %c0_i32_0 = arith.constant 0 : i32
    return %arg0, %c0_i32 : i32, i32
  }
}

</mosaic_0001>

<bundles_post_ra>
// kernel: tpu_custom_call.1
= control target key start
LH: loop header
LB: loop body
LE: loop exit
PB: predicated region body
PF: predicated region fallthrough
CT: control target
= control target key end

     0   :  { %vm45_vm0 = vcmask 64512   ;;  %s1007_s0 = inlined_call_operand.vmem [shape: f32[256,8], index: 0, kind: input, shape index: {}]   ;;  %s1008_s1 = inlined_call_operand.vmem [shape: f32[8,128], index: 1, kind: input, shape index: {}]   ;;  %s1009_s2 = inlined_call_operand.hbm [shape: bf16[256,128], index: 2, kind: output, shape index: {}]  }
   0x1   :  { %v44_v0 = vld [vmem:[%s1008_s1] sm:$0xff]  ;;  %v13_v3 = vld [vmem:[%s1007_s0 + $0x8] sm:$0xff]  ;;  %v14_v5 = vld [vmem:[%s1007_s0 + $0x10] sm:$0xff] }
   0x2   :  { %v12_v1 = vld [vmem:[%s1007_s0] sm:$0xff]  ;;  %767 = vmatprep.subr.mxu0 %v44_v0  ;;  %817 = vmatprep.subr.mxu1 %v44_v0  ;;  %v29_v4 = vld [vmem:[%s1007_s0 + $0x88] sm:$0xff]  ;;  %v30_v6 = vld [vmem:[%s1007_s0 + $0x90] sm:$0xff] }
   0x3   :  { %v28_v2 = vld [vmem:[%s1007_s0 + $0x80] sm:$0xff]  ;;  %768 = vmatpush3.msra.mxu0 %v44_v0  ;;  %818 = vmatpush3.msra.mxu1 %v44_v0  ;;  %v15_v7 = vld [vmem:[%s1007_s0 + $0x18] sm:$0xff]  ;;  %v17_v11 = vld [vmem:[%s1007_s0 + $0x28] sm:$0xff] }
   0x4   :  { %769 = vmatprep.mubr.msk.f32.mxu0 %vm45_vm0, %v12_v1  ;;  %793 = vmatprep.mubr.msk.f32.mxu1 %vm45_vm0, %v28_v2  ;;  %v31_v8 = vld [vmem:[%s1007_s0 + $0x98] sm:$0xff]  ;;  %v16_v9 = vld [vmem:[%s1007_s0 + $0x20] sm:$0xff]  ;;  %v33_v12 = vld [vmem:[%s1007_s0 + $0xa8] sm:$0xff] }
   0x5   :  { %770 = vmatmul.mubr.msk.f32.vlgmr.msra.gmra.mrb[0].mxu0 %vm45_vm0, %v13_v3  ;;  %794 = vmatmul.mubr.msk.f32.vlgmr.msra.gmra.mrb[0].mxu1 %vm45_vm0, %v29_v4  ;;  %v32_v10 = vld [vmem:[%s1007_s0 + $0xa0] sm:$0xff]  ;;  %v18_v13 = vld [vmem:[%s1007_s0 + $0x30] sm:$0xff] }
   0x6   :  { %772 = vmatprep.mubr.msk.f32.mxu0 %vm45_vm0, %v14_v5  ;;  %796 = vmatprep.mubr.msk.f32.mxu1 %vm45_vm0, %v30_v6  ;;  %v34_v14 = vld [vmem:[%s1007_s0 + $0xb0] sm:$0xff] }
   0x9   :  { %773 = vmatmul.mubr.msk.f32.gmra.mrb[2].mxu0 %vm45_vm0, %v15_v7  ;;  %797 = vmatmul.mubr.msk.f32.gmra.mrb[2].mxu1 %vm45_vm0, %v31_v8 }
   0xa   :  { %775 = vmatprep.mubr.msk.f32.mxu0 %vm45_vm0, %v16_v9  ;;  %799 = vmatprep.mubr.msk.f32.mxu1 %vm45_vm0, %v32_v10 }
   0xb   :  { %7 = vsyncpa [#allocation3], 0  ;;  %v19_v15 = vld [vmem:[%s1007_s0 + $0x38] sm:$0xff]  ;;  %v20_v17 = vld [vmem:[%s1007_s0 + $0x40] sm:$0xff] }
   0xc   :  { %v35_v16 = vld [vmem:[%s1007_s0 + $0xb8] sm:$0xff]  ;;  %v36_v18 = vld [vmem:[%s1007_s0 + $0xc0] sm:$0xff]  ;;  %v21_v19 = vld [vmem:[%s1007_s0 + $0x48] sm:$0xff] }
   0xd   :  { %776 = vmatmul.mubr.msk.f32.gmra.mrb[4].mxu0 %vm45_vm0, %v17_v11  ;;  %800 = vmatmul.mubr.msk.f32.gmra.mrb[4].mxu1 %vm45_vm0, %v33_v12  ;;  %v37_v20 = vld [vmem:[%s1007_s0 + $0xc8] sm:$0xff]  ;;  %v22_v21 = vld [vmem:[%s1007_s0 + $0x50] sm:$0xff]  ;;  %v23_v23 = vld [vmem:[%s1007_s0 + $0x58] sm:$0xff] }
   0xe   :  { %778 = vmatprep.mubr.msk.f32.mxu0 %vm45_vm0, %v18_v13  ;;  %802 = vmatprep.mubr.msk.f32.mxu1 %vm45_vm0, %v34_v14  ;;  %v38_v22 = vld [vmem:[%s1007_s0 + $0xd0] sm:$0xff]  ;;  %v39_v24 = vld [vmem:[%s1007_s0 + $0xd8] sm:$0xff]  ;;  %v24_v25 = vld [vmem:[%s1007_s0 + $0x60] sm:$0xff] }
   0xf   :  { %v40_v26 = vld [vmem:[%s1007_s0 + $0xe0] sm:$0xff]  ;;  %v25_v27 = vld [vmem:[%s1007_s0 + $0x68] sm:$0xff]  ;;  %v26_v29 = vld [vmem:[%s1007_s0 + $0x70] sm:$0xff] }
  0x10   :  { %v41_v28 = vld [vmem:[%s1007_s0 + $0xe8] sm:$0xff]  ;;  %v42_v30 = vld [vmem:[%s1007_s0 + $0xf0] sm:$0xff]  ;;  %v27_v31 = vld [vmem:[%s1007_s0 + $0x78] sm:$0xff] }
  0x11   :  { %779 = vmatmul.mubr.msk.f32.gmra.mrb[6].mxu0 %vm45_vm0, %v19_v15  ;;  %803 = vmatmul.mubr.msk.f32.gmra.mrb[6].mxu1 %vm45_vm0, %v35_v16  ;;  %v43_v32 = vld [vmem:[%s1007_s0 + $0xf8] sm:$0xff]  ;;  %s846_s0 = smov [#allocation2]  }
  0x12   :  { %781 = vmatprep.mubr.msk.f32.mxu0 %vm45_vm0, %v20_v17  ;;  %805 = vmatprep.mubr.msk.f32.mxu1 %vm45_vm0, %v36_v18  ;;  %s532_s17 = sshll.u32 %s846_s0, 4  ;;  %s533_s17 = int_to_ptr.vmem [resolvable:$true] %s532_s17 }
  0x13   :  { %s822_s18 = scalar_lea.vmem %s533_s17, 2048  ;;  %p827_p1 = scmp.lt.s32.totalorder %s533_s17, %s533_s17 }
  0x14   :  { %p823_p0 = scmp.ne.s32.totalorder %s533_s17, %s822_s18  ;;  %p828_p2 = scmp.lt.s32.totalorder %s822_s18, %s822_s18 }
  0x15   :  { %782 = vmatmul.mubr.msk.f32.gmra.mrb[8].mxu0 %vm45_vm0, %v21_v19  ;;  %806 = vmatmul.mubr.msk.f32.gmra.mrb[8].mxu1 %vm45_vm0, %v37_v20 }
  0x16   :  { %784 = vmatprep.mubr.msk.f32.mxu0 %vm45_vm0, %v22_v21  ;;  %808 = vmatprep.mubr.msk.f32.mxu1 %vm45_vm0, %v38_v22  ;;  %p829_p3 = por %p828_p2, %p827_p1 }
  0x18   :  { %p830_p4 = pnand %p829_p3, %p823_p0 }
  0x19   :  { %785 = vmatmul.mubr.msk.f32.gmra.mrb[10].mxu0 %vm45_vm0, %v23_v23  ;;  %809 = vmatmul.mubr.msk.f32.gmra.mrb[10].mxu1 %vm45_vm0, %v39_v24 }
  0x1a   :  { %787 = vmatprep.mubr.msk.f32.mxu0 %vm45_vm0, %v24_v25  ;;  %811 = vmatprep.mubr.msk.f32.mxu1 %vm45_vm0, %v40_v26 }
  0x1d   :  { %788 = vmatmul.mubr.msk.f32.gmra.mrb[12].mxu0 %vm45_vm0, %v25_v27  ;;  %812 = vmatmul.mubr.msk.f32.gmra.mrb[12].mxu1 %vm45_vm0, %v41_v28 }
  0x1e   :  { %790 = vmatprep.mubr.msk.f32.mxu0 %vm45_vm0, %v26_v29  ;;  %814 = vmatprep.mubr.msk.f32.mxu1 %vm45_vm0, %v42_v30 }
  0x21   :  { %791 = vmatmul.mubr.msk.f32.gmra.mrb[14].mxu0 %vm45_vm0, %v27_v31  ;;  %815 = vmatmul.mubr.msk.f32.gmra.mrb[14].mxu1 %vm45_vm0, %v43_v32 }
  0xd8   :  { %v771_v33 = vpop.f32.mrb[0].mxu0  ;;  %v795_v34 = vpop.f32.mrb[0].mxu1 }
  0xd9   :  { %v208_v35 = vpop.f32.mrb[1].mxu0  ;;  %v288_v36 = vpop.f32.mrb[1].mxu1 }
  0xda   :  { %v642_v37 = vpack.c.bf16 %v771_v33, %v208_v35  ;;  %v682_v38 = vpack.c.bf16 %v795_v34, %v288_v36 }
  0xdc   :  { %643 = vst [vmem:[#allocation2] sm:$0xff] %v642_v37   ;;  %726 = vst [vmem:[#allocation2 + $0x40] sm:$0xff] %v682_v38   ;;  %v774_v39 = vpop.f32.mrb[2].mxu0  ;;  %v798_v40 = vpop.f32.mrb[2].mxu1 }
  0xdd   :  { %v218_v41 = vpop.f32.mrb[3].mxu0  ;;  %v298_v42 = vpop.f32.mrb[3].mxu1 }
  0xde   :  { %v647_v43 = vpack.c.bf16 %v774_v39, %v218_v41  ;;  %v687_v44 = vpack.c.bf16 %v798_v40, %v298_v42 }
  0xe0   :  { %719 = vst [vmem:[#allocation2 + $0x8] sm:$0xff] %v647_v43   ;;  %727 = vst [vmem:[#allocation2 + $0x48] sm:$0xff] %v687_v44   ;;  %v777_v45 = vpop.f32.mrb[4].mxu0  ;;  %v801_v46 = vpop.f32.mrb[4].mxu1 }
  0xe1   :  { %v228_v47 = vpop.f32.mrb[5].mxu0  ;;  %v308_v48 = vpop.f32.mrb[5].mxu1 }
  0xe2   :  { %v652_v49 = vpack.c.bf16 %v777_v45, %v228_v47  ;;  %v692_v50 = vpack.c.bf16 %v801_v46, %v308_v48 }
  0xe4   :  { %720 = vst [vmem:[#allocation2 + $0x10] sm:$0xff] %v652_v49   ;;  %728 = vst [vmem:[#allocation2 + $0x50] sm:$0xff] %v692_v50   ;;  %v780_v51 = vpop.f32.mrb[6].mxu0  ;;  %v804_v52 = vpop.f32.mrb[6].mxu1 }
  0xe5   :  { %v238_v53 = vpop.f32.mrb[7].mxu0  ;;  %v318_v54 = vpop.f32.mrb[7].mxu1 }
  0xe6   :  { %v657_v55 = vpack.c.bf16 %v780_v51, %v238_v53  ;;  %v697_v56 = vpack.c.bf16 %v804_v52, %v318_v54 }
  0xe8   :  { %721 = vst [vmem:[#allocation2 + $0x18] sm:$0xff] %v657_v55   ;;  %729 = vst [vmem:[#allocation2 + $0x58] sm:$0xff] %v697_v56   ;;  %v783_v57 = vpop.f32.mrb[8].mxu0  ;;  %v807_v58 = vpop.f32.mrb[8].mxu1 }
  0xe9   :  { %v248_v59 = vpop.f32.mrb[9].mxu0  ;;  %v328_v60 = vpop.f32.mrb[9].mxu1 }
  0xea   :  { %v662_v61 = vpack.c.bf16 %v783_v57, %v248_v59  ;;  %v702_v62 = vpack.c.bf16 %v807_v58, %v328_v60 }
  0xec   :  { %722 = vst [vmem:[#allocation2 + $0x20] sm:$0xff] %v662_v61   ;;  %730 = vst [vmem:[#allocation2 + $0x60] sm:$0xff] %v702_v62   ;;  %v786_v63 = vpop.f32.mrb[10].mxu0  ;;  %v810_v0 = vpop.f32.mrb[10].mxu1 }
  0xed   :  { %v258_v1 = vpop.f32.mrb[11].mxu0  ;;  %v338_v2 = vpop.f32.mrb[11].mxu1 }
  0xee   :  { %v667_v3 = vpack.c.bf16 %v786_v63, %v258_v1  ;;  %v707_v4 = vpack.c.bf16 %v810_v0, %v338_v2 }
  0xf0   :  { %723 = vst [vmem:[#allocation2 + $0x28] sm:$0xff] %v667_v3   ;;  %731 = vst [vmem:[#allocation2 + $0x68] sm:$0xff] %v707_v4   ;;  %v789_v5 = vpop.f32.mrb[12].mxu0  ;;  %v813_v6 = vpop.f32.mrb[12].mxu1 }
  0xf1   :  { %v268_v7 = vpop.f32.mrb[13].mxu0  ;;  %v348_v8 = vpop.f32.mrb[13].mxu1 }
  0xf2   :  { %v672_v9 = vpack.c.bf16 %v789_v5, %v268_v7  ;;  %v712_v10 = vpack.c.bf16 %v813_v6, %v348_v8 }
  0xf4   :  { %724 = vst [vmem:[#allocation2 + $0x30] sm:$0xff] %v672_v9   ;;  %732 = vst [vmem:[#allocation2 + $0x70] sm:$0xff] %v712_v10   ;;  %v792_v11 = vpop.f32.mrb[14].mxu0  ;;  %v816_v12 = vpop.f32.mrb[14].mxu1 }
  0xf5   :  { %v278_v13 = vpop.f32.mrb[15].mxu0  ;;  %v358_v14 = vpop.f32.mrb[15].mxu1 }
  0xf6   :  { %v677_v15 = vpack.c.bf16 %v792_v11, %v278_v13  ;;  %v717_v16 = vpack.c.bf16 %v816_v12, %v358_v14 }
  0xf8   :  { %725 = vst [vmem:[#allocation2 + $0x38] sm:$0xff] %v677_v15   ;;  %733 = vst [vmem:[#allocation2 + $0x78] sm:$0xff] %v717_v16  }
  0xf9   :  { %833 = shalt.err (!%p830_p4)
}
  0xfa   :  { %s834_s20 = scalar_lea.hbm %s1009_s2, 2048 }
  0xfb   :  { %p835_p5 = scmp.ne.s32.totalorder %s1009_s2, %s834_s20  ;;  %p838_p6 = scmp.lt.u32.totalorder %s834_s20, %s1009_s2 }
  0xfd   :  { %p840_p7 = pnand %p838_p6, %p835_p5 }
  0xff   :  { %843 = shalt.err (!%p840_p7)
}
 0x100   :  { %s847_s25 = smov 64   ;;  %s848_s26 = smov 4  }
 0x101   :  { %538 = dma.vmem_to_hbm [thread:$0]  %s533_s17, 2048, %s1009_s2, [#allocation3], %s847_s25, %s847_s25, %s848_s26  }
 0x102   :  { %844 = dma.done.wait [#allocation3], 2048  }
 0x103   :  { %845 = vsyncadd [#allocation3], 4294965248 }
 0x104   :  { %542 = vsyncpa [#allocation3], 1 }

</bundles_post_ra>
